<compile_context>
chip_gen: v7x
topology: tpu7x:2x2x1
jax: 0.10.0
libtpu: 0.0.40
codegen_flags: <defaults>
</compile_context>

<pallas_src>
import functools

import jax
import jax.numpy as jnp
import numpy as np
from jax.experimental import pallas as pl
from jax.experimental.pallas import tpu as pltpu


# XLU lane rotation (pltpu.roll == np.roll semantics).  Set to False to fall back
# to the previously-validated slice+concatenate path if the roll lowering over a
# non-128-multiple lane extent (production HW = 3136) ever misbehaves.
_USE_XLU_ROLL = True


def _roll_lanes(a, amt):
    """np.roll(a, amt, axis=-1) on the lane axis of a 2-D VMEM value."""
    n = a.shape[-1]
    amt = amt % n
    if amt == 0:
        return a
    if _USE_XLU_ROLL:
        return pltpu.roll(a, amt, axis=1)
    return jax.lax.concatenate([a[:, n - amt:], a[:, :n - amt]], dimension=1)


def _fused_kernel(x_ref, w1s_ref, w2e_ref, masks_ref, o_ref, *, H, W, shift, bt):
    # x_ref:     (Bt, 128, H*W)  NCHW input, spatial flattened (p = h*W + w)
    # w1s_ref:   (24, 128)       stage-1 weight, rows = tap*8 + g*4 + j4
    # w2e_ref:   (128, 24)       expanded stage-2 weight, cols = tap*8 + g*4 + j4
    # masks_ref: (4, 8, H*W)     [h==0, h==H-1, w==0, w==W-1] masks, 8-row broadcast
    # o_ref:     (Bt, 128, H*W)  NCHW output, c_out = j32*4 + j4
    HW = H * W
    w1s = w1s_ref[...]
    w2e = w2e_ref[...]
    mh0 = masks_ref[0]          # zero where h == 0
    mh1 = masks_ref[1]          # zero where h == H-1
    mw0 = masks_ref[2]          # zero where w == 0
    mw1 = masks_ref[3]          # zero where w == W-1

    for bb in range(bt):
        x = x_ref[bb]                                                    # (128, HW)

        # ---- stage 1: one MXU matmul over the 128 input channels ----
        # y_all[tap*8 + g*4 + j4, p] = sum_k W1[k,tap,j4] * x[k*2+g, p]
        y_all = jnp.dot(w1s, x, preferred_element_type=jnp.float32)     # (24, HW)

        # Combine the 3 H-taps.  The circular input roll + H-tap offset is a
        # cyclic rotation of the flattened spatial axis by whole h-rows (XLU);
        # the zero padding is a per-tap row mask (VPU).
        t4 = None
        for tap in range(3):
            yt = y_all[tap * 8:(tap + 1) * 8, :]                         # aligned 8-row slice
            yt = _roll_lanes(yt, (shift + 1 - tap) * W)                  # h-source (h+tap-1-shift) mod H
            if tap == 0:
                yt = yt * mh0
            elif tap == 2:
                yt = yt * mh1
            t4 = yt if t4 is None else t4 + yt                           # (8, HW), rows g*4 + j4

        # ---- stage 2: stack shifted copies, contract on the MXU ----
        left = _roll_lanes(t4, 1) * mw0                                  # reads w-1 (zero at w==0)
        right = _roll_lanes(t4, HW - 1) * mw1                            # reads w+1 (zero at w==W-1)
        s24 = jnp.concatenate([left, t4, right], axis=0)                 # (24, HW), rows tap*8+g*4+j4

        # One (128,24)@(24,HW) matmul -> full lane-dense NCHW slab, single aligned store.
        o_ref[bb] = jnp.dot(w2e, s24, preferred_element_type=jnp.float32)


def kernel_generated_0_forward(x, w1, w2, shift_direction=1, batch_block=None):
    """x: (B, 128, H, W) f32; w1: (64, 3, 4); w2: (2, 3, 32). Returns (B, 128, H, W)."""
    B, C, H, W = x.shape
    assert C == 128
    HW = H * W
    shift = int(shift_direction)

    if batch_block is None:
        batch_block = 2 if B % 2 == 0 else 1        # Bt=2: safe on v5e/v6e/v7x VMEM budgets
    bt = int(batch_block)
    assert B % bt == 0

    w1f = w1.astype(jnp.float32)
    w2f = w2.astype(jnp.float32)
    eye2 = jnp.eye(2, dtype=jnp.float32)
    eye4 = jnp.eye(4, dtype=jnp.float32)

    # Stage-1 weight, taps stacked on M:  w1s[tap*8+g*4+j4, k*2+g'] = W1[k,tap,j4]*(g==g')
    w1s = jnp.einsum('ktj,gh->tgjkh', w1f, eye2).reshape(24, 128)
    # Expanded stage-2 weight (block-diagonal over j4):
    #   w2e[j32*4+j4, tap*8+g*4+j4'] = W2[g,tap,j32] * (j4==j4')
    w2e = jnp.einsum('gtm,jk->mjtgk', w2f, eye4).reshape(128, 24)

    # Boundary masks for the zero-padded 3-tap windows, pre-broadcast to 8 sublanes.
    p = jnp.arange(HW)
    h_idx = p // W
    w_idx = p % W
    masks1 = jnp.stack([
        (h_idx != 0).astype(jnp.float32),          # stage-1 tap 0
        (h_idx != H - 1).astype(jnp.float32),      # stage-1 tap 2
        (w_idx != 0).astype(jnp.float32),          # stage-2 tap 0
        (w_idx != W - 1).astype(jnp.float32),      # stage-2 tap 2
    ], axis=0)                                     # (4, HW)
    masks = jnp.broadcast_to(masks1[:, None, :], (4, 8, HW))

    x_flat = x.reshape(B, 128, HW)                 # free row-major reshape (stays NCHW)

    fused = pl.pallas_call(
        functools.partial(_fused_kernel, H=H, W=W, shift=shift, bt=bt),
        out_shape=jax.ShapeDtypeStruct((B, 128, HW), jnp.float32),
        grid=(B // bt,),
        in_specs=[
            pl.BlockSpec((bt, 128, HW), lambda b: (b, 0, 0)),      # x (Bt batch elements)
            pl.BlockSpec((24, 128), lambda b: (0, 0)),             # stage-1 weight (fetched once)
            pl.BlockSpec((128, 24), lambda b: (0, 0)),             # stage-2 weight (fetched once)
            pl.BlockSpec((4, 8, HW), lambda b: (0, 0, 0)),         # boundary masks (fetched once)
        ],
        out_specs=pl.BlockSpec((bt, 128, HW), lambda b: (b, 0, 0)),
        compiler_params=pltpu.CompilerParams(
            dimension_semantics=("parallel",),                     # shard batch grid across TCs (v7x)
            vmem_limit_bytes=32 * 1024 * 1024,                     # Bt=2 fits; covers v5e's 16 MiB default
        ),
    )
    y_flat = fused(x_flat, w1s, w2e, masks)
    return y_flat.reshape(B, 128, H, W)            # free reshape back to NCHW


# ---------------------------------------------------------------------------
# Pure-JAX reference (mirrors the torch op chain, generalized B/H/W)
# ---------------------------------------------------------------------------
def reference_forward(x, w1, w2, shift_direction=1):
    B, C, H, W = x.shape
    xr = jnp.roll(x.reshape(B, 64, 2, H, W), shift_direction, axis=3).reshape(B, 128, H, W)
    xpad = jnp.pad(xr, ((0, 0), (0, 0), (1, 1), (0, 0)))
    t3 = jnp.stack([xpad[:, :, i:i + H, :] for i in range(3)], axis=2)      # (B,128,3,H,W)
    t3 = t3.reshape(B, 64, 2, 3, H, W)
    t4 = jnp.einsum('lknihw,kij->lnhwj', t3, w1)                            # (B,2,H,W,4)
    t4pad = jnp.pad(t4, ((0, 0), (0, 0), (0, 0), (1, 1), (0, 0)))
    t5 = jnp.stack([t4pad[:, :, :, k:k + W, :] for k in range(3)], axis=3)  # (B,2,H,3,W,4)
    t6 = jnp.einsum('lnhkwj,nkm->lhwjm', t5, w2)                            # (B,H,W,4,32)
    y = jnp.transpose(t6, (0, 1, 2, 4, 3)).reshape(B, H, W, 128)
    return jnp.transpose(y, (0, 3, 1, 2))


if __name__ == "__main__":
    # Channel structure is fixed by the module (128 in / 128 out, 64x2 groups);
    # batch / spatial are scaled down (module uses 128 x 128 x 56 x 56).
    B, C, H, W = 2, 128, 16, 16

    key = jax.random.PRNGKey(0)
    kx, k1, k2 = jax.random.split(key, 3)
    x = jax.random.normal(kx, (B, C, H, W), jnp.float32)
    w1 = jax.random.normal(k1, (64, 3, 4), jnp.float32)   # self.weights[0]
    w2 = jax.random.normal(k2, (2, 3, 32), jnp.float32)   # self.weights[1]

    fwd = jax.jit(kernel_generated_0_forward, static_argnums=(3,))

    # The module picks shift_direction randomly from {+1, -1}; check both.
    for shift in (1, -1):
        y = jax.block_until_ready(fwd(x, w1, w2, shift))
        y_ref = jax.block_until_ready(reference_forward(x, w1, w2, shift))
        np.testing.assert_allclose(np.asarray(y), np.asarray(y_ref), rtol=2e-4, atol=2e-3)
        assert y.shape == (B, 128, H, W) and y.dtype == jnp.float32

    print("KERNEL_OK")
</pallas_src>

<mosaic_0001>
module attributes {stable_mosaic.version = 11 : i64} {
  func.func @_fused_kernel(%arg0: i32, %arg1: memref<2x128x256xf32, #tpu.memory_space<vmem>>, %arg2: memref<24x128xf32, #tpu.memory_space<vmem>>, %arg3: memref<128x24xf32, #tpu.memory_space<vmem>>, %arg4: memref<4x8x256xf32, #tpu.memory_space<vmem>>, %arg5: memref<2x128x256xf32, #tpu.memory_space<vmem>>) attributes {dimension_semantics = [#tpu.dimension_semantics<parallel>], iteration_bounds = array<i64: 1>, scalar_prefetch = 0 : i64, scratch_operands = 0 : i64, tpu.core_type = #tpu.core_type<tc>, window_params = [{transform_indices = @transform_0, window_bounds = array<i64: 2, 128, 256>}, {pipeline_mode = #tpu.pipeline_mode<synchronous>, transform_indices = @transform_1, window_bounds = array<i64: 24, 128>}, {pipeline_mode = #tpu.pipeline_mode<synchronous>, transform_indices = @transform_2, window_bounds = array<i64: 128, 24>}, {pipeline_mode = #tpu.pipeline_mode<synchronous>, transform_indices = @transform_3, window_bounds = array<i64: 4, 8, 256>}, {transform_indices = @transform_4, window_bounds = array<i64: 2, 128, 256>}]} {
    %c0 = arith.constant 0 : index
    %c0_0 = arith.constant 0 : index
    %0 = vector.load %arg2[%c0, %c0_0] : memref<24x128xf32, #tpu.memory_space<vmem>>, vector<24x128xf32>
    %c0_1 = arith.constant 0 : index
    %c0_2 = arith.constant 0 : index
    %1 = vector.load %arg3[%c0_1, %c0_2] : memref<128x24xf32, #tpu.memory_space<vmem>>, vector<128x24xf32>
    %c0_3 = arith.constant 0 : index
    %c0_4 = arith.constant 0 : index
    %c0_5 = arith.constant 0 : index
    %2 = vector.load %arg4[%c0_3, %c0_4, %c0_5] : memref<4x8x256xf32, #tpu.memory_space<vmem>>, vector<1x8x256xf32>
    %3 = vector.shape_cast %2 : vector<1x8x256xf32> to vector<8x256xf32>
    %c1 = arith.constant 1 : index
    %c0_6 = arith.constant 0 : index
    %c0_7 = arith.constant 0 : index
    %4 = vector.load %arg4[%c1, %c0_6, %c0_7] : memref<4x8x256xf32, #tpu.memory_space<vmem>>, vector<1x8x256xf32>
    %5 = vector.shape_cast %4 : vector<1x8x256xf32> to vector<8x256xf32>
    %c2 = arith.constant 2 : index
    %c0_8 = arith.constant 0 : index
    %c0_9 = arith.constant 0 : index
    %6 = vector.load %arg4[%c2, %c0_8, %c0_9] : memref<4x8x256xf32, #tpu.memory_space<vmem>>, vector<1x8x256xf32>
    %7 = vector.shape_cast %6 : vector<1x8x256xf32> to vector<8x256xf32>
    %c3 = arith.constant 3 : index
    %c0_10 = arith.constant 0 : index
    %c0_11 = arith.constant 0 : index
    %8 = vector.load %arg4[%c3, %c0_10, %c0_11] : memref<4x8x256xf32, #tpu.memory_space<vmem>>, vector<1x8x256xf32>
    %9 = vector.shape_cast %8 : vector<1x8x256xf32> to vector<8x256xf32>
    %c0_12 = arith.constant 0 : index
    %c0_13 = arith.constant 0 : index
    %c0_14 = arith.constant 0 : index
    %10 = vector.load %arg1[%c0_12, %c0_13, %c0_14] : memref<2x128x256xf32, #tpu.memory_space<vmem>>, vector<1x128x256xf32>
    %11 = vector.shape_cast %10 : vector<1x128x256xf32> to vector<128x256xf32>
    %cst = arith.constant dense<0.000000e+00> : vector<24x256xf32>
    %12 = tpu.matmul %0, %11, %cst {dimension_numbers = #tpu.dot_dimension_numbers<[1], [0], [0], [1], [0, 0, 1, 1], [], []>} : vector<24x128xf32>, vector<128x256xf32>, vector<24x256xf32> -> vector<24x256xf32>
    %13 = vector.extract_strided_slice %12 {offsets = [0, 0], sizes = [8, 256], strides = [1, 1]} : vector<24x256xf32> to vector<8x256xf32>
    %c32_i32 = arith.constant 32 : i32
    %14 = tpu.dynamic_rotate %13 by %c32_i32 dim 1 : vector<8x256xf32>, i32 -> vector<8x256xf32>
    %15 = arith.mulf %14, %3 : vector<8x256xf32>
    %16 = vector.extract_strided_slice %12 {offsets = [8, 0], sizes = [8, 256], strides = [1, 1]} : vector<24x256xf32> to vector<8x256xf32>
    %c16_i32 = arith.constant 16 : i32
    %17 = tpu.dynamic_rotate %16 by %c16_i32 dim 1 : vector<8x256xf32>, i32 -> vector<8x256xf32>
    %18 = arith.addf %15, %17 : vector<8x256xf32>
    %19 = vector.extract_strided_slice %12 {offsets = [16, 0], sizes = [8, 256], strides = [1, 1]} : vector<24x256xf32> to vector<8x256xf32>
    %20 = arith.mulf %19, %5 : vector<8x256xf32>
    %21 = arith.addf %18, %20 : vector<8x256xf32>
    %c1_i32 = arith.constant 1 : i32
    %22 = tpu.dynamic_rotate %21 by %c1_i32 dim 1 : vector<8x256xf32>, i32 -> vector<8x256xf32>
    %23 = arith.mulf %22, %7 : vector<8x256xf32>
    %c255_i32 = arith.constant 255 : i32
    %24 = tpu.dynamic_rotate %21 by %c255_i32 dim 1 : vector<8x256xf32>, i32 -> vector<8x256xf32>
    %25 = arith.mulf %24, %9 : vector<8x256xf32>
    %26 = tpu.concatenate %23, %21, %25 in 0 : vector<8x256xf32>, vector<8x256xf32>, vector<8x256xf32> -> vector<24x256xf32>
    %cst_15 = arith.constant dense<0.000000e+00> : vector<128x256xf32>
    %27 = tpu.matmul %1, %26, %cst_15 {dimension_numbers = #tpu.dot_dimension_numbers<[1], [0], [0], [1], [0, 0, 1, 1], [], []>} : vector<128x24xf32>, vector<24x256xf32>, vector<128x256xf32> -> vector<128x256xf32>
    %c0_16 = arith.constant 0 : index
    %c0_17 = arith.constant 0 : index
    %c0_18 = arith.constant 0 : index
    %28 = vector.load %arg5[%c0_16, %c0_17, %c0_18] : memref<2x128x256xf32, #tpu.memory_space<vmem>>, vector<1x128x256xf32>
    %29 = vector.shape_cast %28 : vector<1x128x256xf32> to vector<128x256xf32>
    %30 = vector.shape_cast %27 : vector<128x256xf32> to vector<1x128x256xf32>
    tpu.vector_store %arg5[%c0_16, %c0_17, %c0_18], %30 {strides = array<i32>} : memref<2x128x256xf32, #tpu.memory_space<vmem>>, vector<1x128x256xf32>,
    %c1_19 = arith.constant 1 : index
    %c0_20 = arith.constant 0 : index
    %c0_21 = arith.constant 0 : index
    %31 = vector.load %arg1[%c1_19, %c0_20, %c0_21] : memref<2x128x256xf32, #tpu.memory_space<vmem>>, vector<1x128x256xf32>
    %32 = vector.shape_cast %31 : vector<1x128x256xf32> to vector<128x256xf32>
    %cst_22 = arith.constant dense<0.000000e+00> : vector<24x256xf32>
    %33 = tpu.matmul %0, %32, %cst_22 {dimension_numbers = #tpu.dot_dimension_numbers<[1], [0], [0], [1], [0, 0, 1, 1], [], []>} : vector<24x128xf32>, vector<128x256xf32>, vector<24x256xf32> -> vector<24x256xf32>
    %34 = vector.extract_strided_slice %33 {offsets = [0, 0], sizes = [8, 256], strides = [1, 1]} : vector<24x256xf32> to vector<8x256xf32>
    %c32_i32_23 = arith.constant 32 : i32
    %35 = tpu.dynamic_rotate %34 by %c32_i32_23 dim 1 : vector<8x256xf32>, i32 -> vector<8x256xf32>
    %36 = arith.mulf %35, %3 : vector<8x256xf32>
    %37 = vector.extract_strided_slice %33 {offsets = [8, 0], sizes = [8, 256], strides = [1, 1]} : vector<24x256xf32> to vector<8x256xf32>
    %c16_i32_24 = arith.constant 16 : i32
    %38 = tpu.dynamic_rotate %37 by %c16_i32_24 dim 1 : vector<8x256xf32>, i32 -> vector<8x256xf32>
    %39 = arith.addf %36, %38 : vector<8x256xf32>
    %40 = vector.extract_strided_slice %33 {offsets = [16, 0], sizes = [8, 256], strides = [1, 1]} : vector<24x256xf32> to vector<8x256xf32>
    %41 = arith.mulf %40, %5 : vector<8x256xf32>
    %42 = arith.addf %39, %41 : vector<8x256xf32>
    %c1_i32_25 = arith.constant 1 : i32
    %43 = tpu.dynamic_rotate %42 by %c1_i32_25 dim 1 : vector<8x256xf32>, i32 -> vector<8x256xf32>
    %44 = arith.mulf %43, %7 : vector<8x256xf32>
    %c255_i32_26 = arith.constant 255 : i32
    %45 = tpu.dynamic_rotate %42 by %c255_i32_26 dim 1 : vector<8x256xf32>, i32 -> vector<8x256xf32>
    %46 = arith.mulf %45, %9 : vector<8x256xf32>
    %47 = tpu.concatenate %44, %42, %46 in 0 : vector<8x256xf32>, vector<8x256xf32>, vector<8x256xf32> -> vector<24x256xf32>
    %cst_27 = arith.constant dense<0.000000e+00> : vector<128x256xf32>
    %48 = tpu.matmul %1, %47, %cst_27 {dimension_numbers = #tpu.dot_dimension_numbers<[1], [0], [0], [1], [0, 0, 1, 1], [], []>} : vector<128x24xf32>, vector<24x256xf32>, vector<128x256xf32> -> vector<128x256xf32>
    %c1_28 = arith.constant 1 : index
    %c0_29 = arith.constant 0 : index
    %c0_30 = arith.constant 0 : index
    %49 = vector.load %arg5[%c1_28, %c0_29, %c0_30] : memref<2x128x256xf32, #tpu.memory_space<vmem>>, vector<1x128x256xf32>
    %50 = vector.shape_cast %49 : vector<1x128x256xf32> to vector<128x256xf32>
    %51 = vector.shape_cast %48 : vector<128x256xf32> to vector<1x128x256xf32>
    tpu.vector_store %arg5[%c1_28, %c0_29, %c0_30], %51 {strides = array<i32>} : memref<2x128x256xf32, #tpu.memory_space<vmem>>, vector<1x128x256xf32>,
    return
  }
  func.func @transform_0(%arg0: i32) -> (i32, i32, i32) {
    %c0_i32 = arith.constant 0 : i32
    %c0_i32_0 = arith.constant 0 : i32
    %c0_i32_1 = arith.constant 0 : i32
    return %arg0, %c0_i32, %c0_i32_0 : i32, i32, i32
  }
  func.func @transform_1(%arg0: i32) -> (i32, i32) {
    %c0_i32 = arith.constant 0 : i32
    %c0_i32_0 = arith.constant 0 : i32
    %c0_i32_1 = arith.constant 0 : i32
    return %c0_i32, %c0_i32_0 : i32, i32
  }
  func.func @transform_2(%arg0: i32) -> (i32, i32) {
    %c0_i32 = arith.constant 0 : i32
    %c0_i32_0 = arith.constant 0 : i32
    %c0_i32_1 = arith.constant 0 : i32
    return %c0_i32, %c0_i32_0 : i32, i32
  }
  func.func @transform_3(%arg0: i32) -> (i32, i32, i32) {
    %c0_i32 = arith.constant 0 : i32
    %c0_i32_0 = arith.constant 0 : i32
    %c0_i32_1 = arith.constant 0 : i32
    %c0_i32_2 = arith.constant 0 : i32
    return %c0_i32, %c0_i32_0, %c0_i32_1 : i32, i32, i32
  }
  func.func @transform_4(%arg0: i32) -> (i32, i32, i32) {
    %c0_i32 = arith.constant 0 : i32
    %c0_i32_0 = arith.constant 0 : i32
    %c0_i32_1 = arith.constant 0 : i32
    return %arg0, %c0_i32, %c0_i32_0 : i32, i32, i32
  }
}

</mosaic_0001>

<bundles_post_ra>
// kernel: kernel_generated_0_forward.1
= control target key start
LH: loop header
LB: loop body
LE: loop exit
PB: predicated region body
PF: predicated region fallthrough
CT: control target
= control target key end

     0   :  { %v979_v3 = vmov 0.0   ;;  %s980_s7 = smov 32   ;;  %s981_s8 = smov 16   ;;  %v166_v58 = vlaneseq  ;;  %vm204_vm4 = vcmask 195584   ;;  %s1706_s0 = inlined_call_operand.vmem [shape: f32[2,128,256], index: 0, kind: input, shape index: {}]   ;;  %s1707_s1 = inlined_call_operand.vmem [shape: f32[24,128], index: 1, kind: input, shape index: {}]   ;;  %s1708_s3 = inlined_call_operand.vmem [shape: f32[4,8,256], index: 3, kind: input, shape index: {}]   ;;  %s1709_s2 = inlined_call_operand.vmem [shape: f32[128,24], index: 2, kind: input, shape index: {}]   ;;  %s1710_s4 = inlined_call_operand.vmem [shape: f32[2,128,256], index: 4, kind: output, shape index: {}]  }
   0x1   :  { %v48_v0 = vld [vmem:[%s1706_s0 + $0x8] sm:$0xff]  ;;  %v50_v1 = vld [vmem:[%s1706_s0 + $0x18] sm:$0xff]  ;;  %v47_v2 = vld [vmem:[%s1706_s0] sm:$0xff]  ;;  %143 = vmatprep.mubr.f32.mxu0 %v979_v3  ;;  %371 = vmatprep.mubr.f32.mxu1 %v979_v3  ;;  %s982_s16 = smov 1   ;;  %s983_s17 = smov 127  }
   0x2   :  { %v898_v4 = vpack.c.bf16 %v50_v1, %v48_v0  ;;  %v49_v5 = vld [vmem:[%s1706_s0 + $0x10] sm:$0xff]  ;;  %v52_v6 = vld [vmem:[%s1706_s0 + $0x28] sm:$0xff]  ;;  %v54_v7 = vld [vmem:[%s1706_s0 + $0x38] sm:$0xff]  ;;  %v1132_v59 = vand.u32 127, %v166_v58 }
   0x3   :  { %v900_v8 = vpack.c.bf16 %v49_v5, %v47_v2  ;;  %v902_v9 = vpack.c.bf16 %v54_v7, %v52_v6  ;;  %v51_v10 = vld [vmem:[%s1706_s0 + $0x20] sm:$0xff]  ;;  %v53_v11 = vld [vmem:[%s1706_s0 + $0x30] sm:$0xff]  ;;  %v56_v12 = vld [vmem:[%s1706_s0 + $0x48] sm:$0xff] }
   0x4   :  { %899 = vmatprep.subr.bf16.mxu0 %v898_v4  ;;  %v58_v13 = vld [vmem:[%s1706_s0 + $0x58] sm:$0xff]  ;;  %v904_v14 = vpack.c.bf16 %v53_v11, %v51_v10  ;;  %v55_v16 = vld [vmem:[%s1706_s0 + $0x40] sm:$0xff]  ;;  %v57_v17 = vld [vmem:[%s1706_s0 + $0x50] sm:$0xff]  ;;  %vm168_vm0 = vcmp.lt.s32.totalorder %v1132_v59, 32  ;;  %vm177_vm1 = vcmp.lt.s32.totalorder %v1132_v59, 16  ;;  %vm190_vm2 = vcmp.lt.s32.totalorder %v1132_v59, 1 }
   0x5   :  { %901 = vmatpush1.bf16.msra.mxu0 %v900_v8  ;;  %v906_v15 = vpack.c.bf16 %v58_v13, %v56_v12  ;;  %v60_v18 = vld [vmem:[%s1706_s0 + $0x68] sm:$0xff]  ;;  %v62_v19 = vld [vmem:[%s1706_s0 + $0x78] sm:$0xff]  ;;  %v908_v20 = vpack.c.bf16 %v57_v17, %v55_v16  ;;  %v59_v22 = vld [vmem:[%s1706_s0 + $0x60] sm:$0xff]  ;;  %vm199_vm3 = vcmp.lt.s32.totalorder %v1132_v59, 127 }
   0x6   :  { %903 = vmatprep.subr.bf16.mxu0 %v902_v9  ;;  %v910_v21 = vpack.c.bf16 %v62_v19, %v60_v18  ;;  %v61_v23 = vld [vmem:[%s1706_s0 + $0x70] sm:$0xff]  ;;  %v64_v24 = vld [vmem:[%s1706_s0 + $0x88] sm:$0xff]  ;;  %v66_v25 = vld [vmem:[%s1706_s0 + $0x98] sm:$0xff] }
   0x7   :  { %v912_v26 = vpack.c.bf16 %v61_v23, %v59_v22  ;;  %v914_v27 = vpack.c.bf16 %v66_v25, %v64_v24  ;;  %v63_v28 = vld [vmem:[%s1706_s0 + $0x80] sm:$0xff]  ;;  %v65_v29 = vld [vmem:[%s1706_s0 + $0x90] sm:$0xff]  ;;  %v68_v30 = vld [vmem:[%s1706_s0 + $0xa8] sm:$0xff] }
   0x8   :  { %v70_v31 = vld [vmem:[%s1706_s0 + $0xb8] sm:$0xff]  ;;  %v916_v32 = vpack.c.bf16 %v65_v29, %v63_v28  ;;  %v67_v34 = vld [vmem:[%s1706_s0 + $0xa0] sm:$0xff]  ;;  %v69_v35 = vld [vmem:[%s1706_s0 + $0xb0] sm:$0xff] }
   0x9   :  { %905 = vmatpush1.bf16.msra.mxu0 %v904_v14  ;;  %v918_v33 = vpack.c.bf16 %v70_v31, %v68_v30  ;;  %v72_v36 = vld [vmem:[%s1706_s0 + $0xc8] sm:$0xff]  ;;  %v74_v37 = vld [vmem:[%s1706_s0 + $0xd8] sm:$0xff]  ;;  %v920_v38 = vpack.c.bf16 %v69_v35, %v67_v34  ;;  %v71_v40 = vld [vmem:[%s1706_s0 + $0xc0] sm:$0xff] }
   0xa   :  { %907 = vmatprep.subr.bf16.mxu0 %v906_v15  ;;  %v922_v39 = vpack.c.bf16 %v74_v37, %v72_v36  ;;  %v73_v41 = vld [vmem:[%s1706_s0 + $0xd0] sm:$0xff]  ;;  %v76_v42 = vld [vmem:[%s1706_s0 + $0xe8] sm:$0xff]  ;;  %v78_v43 = vld [vmem:[%s1706_s0 + $0xf8] sm:$0xff] }
   0xb   :  { %v924_v44 = vpack.c.bf16 %v73_v41, %v71_v40  ;;  %v926_v45 = vpack.c.bf16 %v78_v43, %v76_v42  ;;  %v75_v46 = vld [vmem:[%s1706_s0 + $0xe0] sm:$0xff]  ;;  %v77_v47 = vld [vmem:[%s1706_s0 + $0xf0] sm:$0xff]  ;;  %v1117_v50 = vld [vmem:[%s1707_s1 + $0x8] sm:$0xff] }
   0xc   :  { %v928_v48 = vpack.c.bf16 %v77_v47, %v75_v46  ;;  %v1110_v49 = vld [vmem:[%s1707_s1] sm:$0xff]  ;;  %v1124_v51 = vld [vmem:[%s1707_s1 + $0x10] sm:$0xff]  ;;  %v1143_v0 = vld [vmem:[%s1708_s3 + $0x8] sm:$0xff] }
   0xd   :  { %909 = vmatpush1.bf16.msra.mxu0 %v908_v20  ;;  %v1138_v61 = vld [vmem:[%s1708_s3] sm:$0xff]  ;;  %v1152_v4 = vld [vmem:[%s1708_s3 + $0x10] sm:$0xff]  ;;  %v1157_v5 = vld [vmem:[%s1708_s3 + $0x18] sm:$0xff] }
   0xe   :  { %911 = vmatprep.subr.bf16.mxu0 %v910_v21  ;;  %v1176_v17 = vld [vmem:[%s1708_s3 + $0x20] sm:$0xff]  ;;  %v1181_v18 = vld [vmem:[%s1708_s3 + $0x28] sm:$0xff]  ;;  %v1193_v25 = vld [vmem:[%s1708_s3 + $0x38] sm:$0xff] }
   0xf   :  { %v819_v31 = vld [vmem:[%s1706_s0 + $0x108] sm:$0xff]  ;;  %v818_v36 = vld [vmem:[%s1706_s0 + $0x100] sm:$0xff]  ;;  %v820_v37 = vld [vmem:[%s1706_s0 + $0x110] sm:$0xff] }
  0x10   :  { %v1227_v42 = vld [vmem:[%s1709_s2] sm:$0xff]  ;;  %v936_v43 = vpack.c.bf16 %v820_v37, %v818_v36  ;;  %v824_v46 = vld [vmem:[%s1706_s0 + $0x130] sm:$0xff]  ;;  %v827_v47 = vld [vmem:[%s1706_s0 + $0x148] sm:$0xff] }
  0x11   :  { %913 = vmatpush1.bf16.msra.mxu0 %v912_v26  ;;  %v833_v58 = vld [vmem:[%s1706_s0 + $0x178] sm:$0xff]  ;;  %v846_v36 = vld [vmem:[%s1706_s0 + $0x1e0] sm:$0xff]  ;;  %v848_v37 = vld [vmem:[%s1706_s0 + $0x1f0] sm:$0xff] }
  0x12   :  { %915 = vmatprep.subr.bf16.mxu0 %v914_v27 }
  0x15   :  { %917 = vmatpush1.bf16.msra.mxu0 %v916_v32  ;;  %v821_v32 = vld [vmem:[%s1706_s0 + $0x118] sm:$0xff] }
  0x16   :  { %919 = vmatprep.subr.bf16.mxu0 %v918_v33  ;;  %v1206_v33 = vld [vmem:[%s1708_s3 + $0x30] sm:$0xff]  ;;  %v934_v40 = vpack.c.bf16 %v821_v32, %v819_v31  ;;  %v849_v31 = vld [vmem:[%s1706_s0 + $0x1f8] sm:$0xff] }
  0x17   :  { %v1347_v32 = vld [vmem:[%s1709_s2 + $0x30] sm:$0xff] }
  0x19   :  { %921 = vmatpush1.bf16.msra.mxu0 %v920_v38  ;;  %v823_v38 = vld [vmem:[%s1706_s0 + $0x128] sm:$0xff] }
  0x1a   :  { %923 = vmatprep.subr.bf16.mxu0 %v922_v39  ;;  %v825_v39 = vld [vmem:[%s1706_s0 + $0x138] sm:$0xff] }
  0x1d   :  { %925 = vmatpush1.bf16.msra.mxu0 %v924_v44  ;;  %v938_v44 = vpack.c.bf16 %v825_v39, %v823_v38  ;;  %v1361_v38 = vld [vmem:[%s1709_s2 + $0x38] sm:$0xff]  ;;  %v964_v39 = vpack.c.bf16 %v848_v37, %v846_v36 }
  0x1e   :  { %927 = vmatprep.subr.bf16.mxu0 %v926_v45  ;;  %v822_v45 = vld [vmem:[%s1706_s0 + $0x120] sm:$0xff] }
  0x21   :  { %929 = vmatpush1.bf16.msra.mxu0 %v928_v48  ;;  %v829_v48 = vld [vmem:[%s1706_s0 + $0x158] sm:$0xff] }
  0x24   :  { %144 = vmatmul.mubr.f32.vlgmr.msra.gmra.mrb[0].mxu0 %v1110_v49 }
  0x25   :  { %149 = vmatprep.mubr.f32.mxu0 %v979_v3 }
  0x28   :  { %150 = vmatmul.mubr.f32.gmra.mrb[2].mxu0 %v1117_v50 }
  0x29   :  { %155 = vmatprep.mubr.f32.mxu0 %v979_v3 }
  0x2c   :  { %156 = vmatmul.mubr.f32.gmra.mrb[4].mxu0 %v1124_v51 }
  0x2d   :  { %317 = vmatprep.mubr.f32.mxu0 %v979_v3 }
  0xf7   :  { %v145_v52 = vpop.f32.mrb[0].mxu0 }
  0xf8   :  { %162 = vrot.lane.b32.xlu0 %v145_v52, %s980_s7  ;;  %v147_v53 = vpop.f32.mrb[1].mxu0  ;;  %v1247_v52 = vld [vmem:[%s1709_s2 + $0x8] sm:$0xff] }
  0xfb   :  { %v151_v54 = vpop.f32.mrb[2].mxu0 }
  0xfc   :  { %164 = vrot.lane.b32.xlu0 %v147_v53, %s980_s7  ;;  %173 = vrot.lane.b32.xlu1 %v151_v54, %s981_s8  ;;  %v153_v55 = vpop.f32.mrb[3].mxu0  ;;  %v940_v53 = vpack.c.bf16 %v824_v46, %v822_v45  ;;  %v942_v54 = vpack.c.bf16 %v829_v48, %v827_v47 }
  0xff   :  { %v157_v56 = vpop.f32.mrb[4].mxu0 }
 0x100   :  { %175 = vrot.lane.b32.xlu1 %v153_v55, %s981_s8  ;;  %v159_v57 = vpop.f32.mrb[5].mxu0  ;;  %v182_v8 = vmul.f32 %v1152_v4, %v157_v56  ;;  %v826_v55 = vld [vmem:[%s1706_s0 + $0x140] sm:$0xff]  ;;  %v828_v56 = vld [vmem:[%s1706_s0 + $0x150] sm:$0xff] }
 0x101   :  { %v183_v10 = vmul.f32 %v1157_v5, %v159_v57  ;;  %v831_v57 = vld [vmem:[%s1706_s0 + $0x168] sm:$0xff] }
 0x16a   :  { %v163_v60 = vpop.permute.xlu0 %162 }
 0x16e   :  { %v165_v62 = vpop.permute.xlu0 %164  ;;  %v174_v63 = vpop.permute.xlu1 %173 }
 0x16f   :  { %v169_v1 = vsel %vm168_vm0, %v163_v60, %v165_v62  ;;  %v170_v2 = vsel %vm168_vm0, %v165_v62, %v163_v60  ;;  %v1267_v60 = vld [vmem:[%s1709_s2 + $0x10] sm:$0xff]  ;;  %v944_v62 = vpack.c.bf16 %v828_v56, %v826_v55 }
 0x170   :  { %v171_v6 = vmul.f32 %v170_v2, %v1138_v61  ;;  %v172_v7 = vmul.f32 %v169_v1, %v1143_v0  ;;  %v830_v1 = vld [vmem:[%s1706_s0 + $0x160] sm:$0xff]  ;;  %v832_v2 = vld [vmem:[%s1706_s0 + $0x170] sm:$0xff] }
 0x172   :  { %v176_v9 = vpop.permute.xlu1 %175 }
 0x173   :  { %v178_v11 = vsel %vm177_vm1, %v174_v63, %v176_v9  ;;  %v179_v12 = vsel %vm177_vm1, %v176_v9, %v174_v63  ;;  %v946_v63 = vpack.c.bf16 %v833_v58, %v831_v57  ;;  %v948_v9 = vpack.c.bf16 %v832_v2, %v830_v1 }
 0x174   :  { %v180_v13 = vadd.f32 %v179_v12, %v171_v6  ;;  %v181_v14 = vadd.f32 %v178_v11, %v172_v7  ;;  %v835_v6 = vld [vmem:[%s1706_s0 + $0x188] sm:$0xff]  ;;  %v837_v7 = vld [vmem:[%s1706_s0 + $0x198] sm:$0xff]  ;;  %v834_v11 = vld [vmem:[%s1706_s0 + $0x180] sm:$0xff] }
 0x175   :  { %v836_v12 = vld [vmem:[%s1706_s0 + $0x190] sm:$0xff] }
 0x176   :  { %v185_v15 = vadd.f32 %v183_v10, %v181_v14  ;;  %v184_v16 = vadd.f32 %v182_v8, %v180_v13  ;;  %v1287_v8 = vld [vmem:[%s1709_s2 + $0x18] sm:$0xff]  ;;  %v950_v10 = vpack.c.bf16 %v837_v7, %v835_v6  ;;  %v839_v13 = vld [vmem:[%s1706_s0 + $0x1a8] sm:$0xff] }
 0x177   :  { %v841_v14 = vld [vmem:[%s1706_s0 + $0x1b8] sm:$0xff] }
 0x178   :  { %186 = vrot.lane.b32.xlu0 %v184_v16, %s982_s16  ;;  %188 = vrot.lane.b32.xlu1 %v185_v15, %s982_s16 }
 0x17c   :  { %195 = vrot.lane.b32.xlu0 %v184_v16, %s983_s17  ;;  %197 = vrot.lane.b32.xlu1 %v185_v15, %s983_s17 }
 0x1ea   :  { %v187_v19 = vpop.permute.xlu0 %186  ;;  %v189_v20 = vpop.permute.xlu1 %188 }
 0x1eb   :  { %v191_v21 = vsel %vm190_vm2, %v187_v19, %v189_v20  ;;  %v192_v22 = vsel %vm190_vm2, %v189_v20, %v187_v19  ;;  %v954_v19 = vpack.c.bf16 %v841_v14, %v839_v13  ;;  %v838_v20 = vld [vmem:[%s1706_s0 + $0x1a0] sm:$0xff]  ;;  %v1456_v13 = vld [vmem:[%s1709_s2 + $0x58] sm:$0xff] }
 0x1ec   :  { %v193_v23 = vmul.f32 %v1176_v17, %v192_v22  ;;  %v194_v24 = vmul.f32 %v1181_v18, %v191_v21  ;;  %v840_v21 = vld [vmem:[%s1706_s0 + $0x1b0] sm:$0xff]  ;;  %v843_v22 = vld [vmem:[%s1706_s0 + $0x1c8] sm:$0xff]  ;;  %v1464_v14 = vld [vmem:[%s1709_s2 + $0x60] sm:$0xff] }
 0x1ee   :  { %v932_v26 = vpack.c.bf16 %v184_v16, %v193_v23  ;;  %v196_v27 = vpop.permute.xlu0 %195  ;;  %v198_v28 = vpop.permute.xlu1 %197  ;;  %v930_v29 = vpack.c.bf16 %v185_v15, %v194_v24  ;;  %v1307_v15 = vld [vmem:[%s1709_s2 + $0x20] sm:$0xff]  ;;  %v952_v16 = vpack.c.bf16 %v836_v12, %v834_v11  ;;  %v845_v23 = vld [vmem:[%s1706_s0 + $0x1d8] sm:$0xff]  ;;  %v1327_v24 = vld [vmem:[%s1709_s2 + $0x28] sm:$0xff] }
 0x1ef   :  { %v201_v30 = vsel %vm199_vm3, %v198_v28, %v196_v27  ;;  %v200_v34 = vsel %vm199_vm3, %v196_v27, %v198_v28  ;;  %v958_v27 = vpack.c.bf16 %v845_v23, %v843_v22  ;;  %v842_v28 = vld [vmem:[%s1706_s0 + $0x1c0] sm:$0xff]  ;;  %v1440_v11 = vld [vmem:[%s1709_s2 + $0x48] sm:$0xff]  ;;  %v1448_v12 = vld [vmem:[%s1709_s2 + $0x50] sm:$0xff] }
 0x1f0   :  { %v203_v35 = vmul.f32 %v1193_v25, %v201_v30  ;;  %931 = vmatprep.subr.bf16.mxu0 %v930_v29  ;;  %970 = vmatprep.subr.bf16.mxu1 %v930_v29  ;;  %v202_v41 = vmul.f32 %v1206_v33, %v200_v34  ;;  %v844_v29 = vld [vmem:[%s1706_s0 + $0x1d0] sm:$0xff]  ;;  %v847_v30 = vld [vmem:[%s1706_s0 + $0x1e8] sm:$0xff] }
 0x1f1   :  { %933 = vmatpush1.bf16.msra.mxu0 %v932_v26  ;;  %972 = vmatpush1.bf16.msra.mxu1 %v932_v26  ;;  %v956_v26 = vpack.c.bf16 %v840_v21, %v838_v20  ;;  %v960_v34 = vpack.c.bf16 %v844_v29, %v842_v28 }
 0x1f2   :  { %257 = vmatprep.subr.mxu0 %v203_v35  ;;  %971 = vmatprep.subr.mxu1 %v203_v35  ;;  %v962_v35 = vpack.c.bf16 %v849_v31, %v847_v30 }
 0x1f5   :  { %258 = vmatpush1.msra.mxu0 %v202_v41  ;;  %973 = vmatpush1.msra.mxu1 %v202_v41 }
 0x1f6   :  { %802 = vmatmul.mubr.msk.f32.vlgmr.msra.gmra.mrb[6].mxu0 %vm204_vm4, %v1227_v42  ;;  %935 = vmatprep.subr.bf16.mxu0 %v934_v40  ;;  %v1369_v40 = vld [vmem:[%s1709_s2 + $0x40] sm:$0xff] }
 0x1f7   :  { %323 = vmatprep.mubr.f32.mxu0 %v979_v3  ;;  %937 = vmatpush1.bf16.msra.mxu0 %v936_v43 }
 0x1f8   :  { %939 = vmatprep.subr.bf16.mxu0 %v938_v44  ;;  %811 = vmatmul.mubr.msk.f32.vlgmr.msra.gmra.mrb[0].mxu1 %vm204_vm4, %v1440_v11 }
 0x1f9   :  { %377 = vmatprep.mubr.f32.mxu1 %v979_v3 }
 0x1fa   :  { %803 = vmatmul.mubr.msk.f32.gmra.mrb[8].mxu0 %vm204_vm4, %v1247_v52 }
 0x1fb   :  { %329 = vmatprep.mubr.f32.mxu0 %v979_v3  ;;  %941 = vmatpush1.bf16.msra.mxu0 %v940_v53 }
 0x1fc   :  { %943 = vmatprep.subr.bf16.mxu0 %v942_v54  ;;  %812 = vmatmul.mubr.msk.f32.gmra.mrb[2].mxu1 %vm204_vm4, %v1448_v12 }
 0x1fd   :  { %383 = vmatprep.mubr.f32.mxu1 %v979_v3 }
 0x1fe   :  { %804 = vmatmul.mubr.msk.f32.gmra.mrb[10].mxu0 %vm204_vm4, %v1267_v60 }
 0x1ff   :  { %335 = vmatprep.mubr.f32.mxu0 %v979_v3  ;;  %945 = vmatpush1.bf16.msra.mxu0 %v944_v62 }
 0x200   :  { %947 = vmatprep.subr.bf16.mxu0 %v946_v63  ;;  %813 = vmatmul.mubr.msk.f32.gmra.mrb[4].mxu1 %vm204_vm4, %v1456_v13 }
 0x201   :  { %389 = vmatprep.mubr.f32.mxu1 %v979_v3 }
 0x202   :  { %805 = vmatmul.mubr.msk.f32.gmra.mrb[12].mxu0 %vm204_vm4, %v1287_v8 }
 0x203   :  { %341 = vmatprep.mubr.f32.mxu0 %v979_v3  ;;  %949 = vmatpush1.bf16.msra.mxu0 %v948_v9 }
 0x204   :  { %951 = vmatprep.subr.bf16.mxu0 %v950_v10  ;;  %814 = vmatmul.mubr.msk.f32.gmra.mrb[6].mxu1 %vm204_vm4, %v1464_v14 }
 0x205   :  { %395 = vmatprep.mubr.f32.mxu1 %v979_v3 }
 0x206   :  { %806 = vmatmul.mubr.msk.f32.gmra.mrb[14].mxu0 %vm204_vm4, %v1307_v15 }
 0x207   :  { %347 = vmatprep.mubr.f32.mxu0 %v979_v3  ;;  %953 = vmatpush1.bf16.msra.mxu0 %v952_v16  ;;  %v1472_v16 = vld [vmem:[%s1709_s2 + $0x68] sm:$0xff] }
 0x208   :  { %955 = vmatprep.subr.bf16.mxu0 %v954_v19  ;;  %815 = vmatmul.mubr.msk.f32.gmra.mrb[8].mxu1 %vm204_vm4, %v1472_v16  ;;  %v1480_v19 = vld [vmem:[%s1709_s2 + $0x70] sm:$0xff] }
 0x209   :  { %401 = vmatprep.mubr.f32.mxu1 %v979_v3 }
 0x20a   :  { %807 = vmatmul.mubr.msk.f32.gmra.mrb[16].mxu0 %vm204_vm4, %v1327_v24 }
 0x20b   :  { %353 = vmatprep.mubr.f32.mxu0 %v979_v3  ;;  %957 = vmatpush1.bf16.msra.mxu0 %v956_v26  ;;  %v1492_v26 = vld [vmem:[%s1709_s2 + $0x78] sm:$0xff] }
 0x20c   :  { %959 = vmatprep.subr.bf16.mxu0 %v958_v27  ;;  %816 = vmatmul.mubr.msk.f32.gmra.mrb[10].mxu1 %vm204_vm4, %v1480_v19 }
 0x20d   :  { %407 = vmatprep.mubr.f32.mxu1 %v979_v3 }
 0x20e   :  { %808 = vmatmul.mubr.msk.f32.gmra.mrb[18].mxu0 %vm204_vm4, %v1347_v32 }
 0x20f   :  { %359 = vmatprep.mubr.f32.mxu0 %v979_v3  ;;  %961 = vmatpush1.bf16.msra.mxu0 %v960_v34 }
 0x210   :  { %963 = vmatprep.subr.bf16.mxu0 %v962_v35  ;;  %817 = vmatmul.mubr.msk.f32.gmra.mrb[12].mxu1 %vm204_vm4, %v1492_v26 }
 0x211   :  { %662 = vmatprep.mubr.f32.mxu1 %v979_v3 }
 0x212   :  { %809 = vmatmul.mubr.msk.f32.gmra.mrb[20].mxu0 %vm204_vm4, %v1361_v38 }
 0x213   :  { %365 = vmatprep.mubr.f32.mxu0 %v979_v3  ;;  %965 = vmatpush1.bf16.msra.mxu0 %v964_v39 }
 0x216   :  { %810 = vmatmul.mubr.msk.f32.gmra.mrb[22].mxu0 %vm204_vm4, %v1369_v40 }
 0x217   :  { %543 = vmatprep.mubr.f32.mxu0 %v979_v3 }
 0x21a   :  { %544 = vmatmul.mubr.f32.vlgmr.msra.gmra.mrb[24].mxu0 %v1110_v49 }
 0x21b   :  { %549 = vmatprep.mubr.f32.mxu0 %v979_v3 }
 0x21e   :  { %550 = vmatmul.mubr.f32.gmra.mrb[26].mxu0 %v1117_v50 }
 0x21f   :  { %555 = vmatprep.mubr.f32.mxu0 %v979_v3 }
 0x222   :  { %556 = vmatmul.mubr.f32.gmra.mrb[28].mxu0 %v1124_v51 }
 0x2c9   :  { %v319_v41 = vpop.f32.mrb[6].mxu0 }
 0x2ca   :  { %414 = vst [vmem:[%s1710_s4] sm:$0xff] %v319_v41  ;;  %v321_v43 = vpop.f32.mrb[7].mxu0 }
 0x2cb   :  { %415 = vst [vmem:[%s1710_s4 + $0x8] sm:$0xff] %v321_v43  ;;  %v373_v59 = vpop.f32.mrb[0].mxu1 }
 0x2cc   :  { %432 = vst [vmem:[%s1710_s4 + $0x90] sm:$0xff] %v373_v59 }
 0x2cd   :  { %v325_v44 = vpop.f32.mrb[8].mxu0 }
 0x2ce   :  { %416 = vst [vmem:[%s1710_s4 + $0x10] sm:$0xff] %v325_v44  ;;  %v327_v49 = vpop.f32.mrb[9].mxu0 }
 0x2cf   :  { %417 = vst [vmem:[%s1710_s4 + $0x18] sm:$0xff] %v327_v49 }
 0x2d1   :  { %v331_v50 = vpop.f32.mrb[10].mxu0 }
 0x2d2   :  { %418 = vst [vmem:[%s1710_s4 + $0x20] sm:$0xff] %v331_v50  ;;  %v333_v51 = vpop.f32.mrb[11].mxu0 }
 0x2d3   :  { %419 = vst [vmem:[%s1710_s4 + $0x28] sm:$0xff] %v333_v51 }
 0x2d5   :  { %v337_v45 = vpop.f32.mrb[12].mxu0 }
 0x2d6   :  { %420 = vst [vmem:[%s1710_s4 + $0x30] sm:$0xff] %v337_v45  ;;  %v339_v46 = vpop.f32.mrb[13].mxu0 }
 0x2d7   :  { %421 = vst [vmem:[%s1710_s4 + $0x38] sm:$0xff] %v339_v46 }
 0x2d9   :  { %v343_v47 = vpop.f32.mrb[14].mxu0 }
 0x2da   :  { %422 = vst [vmem:[%s1710_s4 + $0x40] sm:$0xff] %v343_v47  ;;  %v345_v48 = vpop.f32.mrb[15].mxu0 }
 0x2db   :  { %423 = vst [vmem:[%s1710_s4 + $0x48] sm:$0xff] %v345_v48 }
 0x2dd   :  { %v349_v53 = vpop.f32.mrb[16].mxu0 }
 0x2de   :  { %424 = vst [vmem:[%s1710_s4 + $0x50] sm:$0xff] %v349_v53  ;;  %v351_v54 = vpop.f32.mrb[17].mxu0 }
 0x2df   :  { %425 = vst [vmem:[%s1710_s4 + $0x58] sm:$0xff] %v351_v54 }
 0x2e1   :  { %v355_v55 = vpop.f32.mrb[18].mxu0 }
 0x2e2   :  { %426 = vst [vmem:[%s1710_s4 + $0x60] sm:$0xff] %v355_v55  ;;  %v357_v56 = vpop.f32.mrb[19].mxu0 }
 0x2e3   :  { %427 = vst [vmem:[%s1710_s4 + $0x68] sm:$0xff] %v357_v56 }
 0x2e5   :  { %v361_v57 = vpop.f32.mrb[20].mxu0 }
 0x2e6   :  { %428 = vst [vmem:[%s1710_s4 + $0x70] sm:$0xff] %v361_v57  ;;  %v363_v58 = vpop.f32.mrb[21].mxu0 }
 0x2e7   :  { %429 = vst [vmem:[%s1710_s4 + $0x78] sm:$0xff] %v363_v58 }
 0x2e9   :  { %v367_v62 = vpop.f32.mrb[22].mxu0 }
 0x2ea   :  { %430 = vst [vmem:[%s1710_s4 + $0x80] sm:$0xff] %v367_v62  ;;  %v369_v63 = vpop.f32.mrb[23].mxu0 }
 0x2eb   :  { %431 = vst [vmem:[%s1710_s4 + $0x88] sm:$0xff] %v369_v63 }
 0x2ed   :  { %v545_v1 = vpop.f32.mrb[24].mxu0 }
 0x2ee   :  { %562 = vrot.lane.b32.xlu0 %v545_v1, %s980_s7  ;;  %v547_v2 = vpop.f32.mrb[25].mxu0 }
 0x2ef   :  { %564 = vrot.lane.b32.xlu1 %v547_v2, %s980_s7 }
 0x2f1   :  { %v551_v6 = vpop.f32.mrb[26].mxu0 }
 0x2f2   :  { %570 = vrot.lane.b32.xlu0 %v551_v6, %s981_s8  ;;  %v553_v7 = vpop.f32.mrb[27].mxu0 }
 0x2f3   :  { %572 = vrot.lane.b32.xlu1 %v553_v7, %s981_s8 }
 0x2f5   :  { %v557_v9 = vpop.f32.mrb[28].mxu0 }
 0x2f6   :  { %v559_v10 = vpop.f32.mrb[29].mxu0  ;;  %v578_v30 = vmul.f32 %v1152_v4, %v557_v9 }
 0x2f7   :  { %v579_v34 = vmul.f32 %v1157_v5, %v559_v10 }
 0x360   :  { %v563_v20 = vpop.permute.xlu0 %562 }
 0x361   :  { %v565_v21 = vpop.permute.xlu1 %564 }
 0x362   :  { %v566_v22 = vsel %vm168_vm0, %v563_v20, %v565_v21  ;;  %v567_v23 = vsel %vm168_vm0, %v565_v21, %v563_v20 }
 0x363   :  { %v568_v28 = vmul.f32 %v567_v23, %v1138_v61  ;;  %v569_v29 = vmul.f32 %v566_v22, %v1143_v0 }
 0x364   :  { %v571_v27 = vpop.permute.xlu0 %570 }
 0x365   :  { %v573_v31 = vpop.permute.xlu1 %572 }
 0x366   :  { %v574_v35 = vsel %vm177_vm1, %v571_v27, %v573_v31  ;;  %v575_v36 = vsel %vm177_vm1, %v573_v31, %v571_v27 }
 0x367   :  { %v576_v37 = vadd.f32 %v575_v36, %v568_v28  ;;  %v577_v39 = vadd.f32 %v574_v35, %v569_v29 }
 0x369   :  { %v581_v41 = vadd.f32 %v579_v34, %v577_v39  ;;  %v580_v43 = vadd.f32 %v578_v30, %v576_v37 }
 0x36b   :  { %582 = vrot.lane.b32.xlu0 %v580_v43, %s982_s16  ;;  %584 = vrot.lane.b32.xlu1 %v581_v41, %s982_s16 }
 0x36f   :  { %590 = vrot.lane.b32.xlu0 %v580_v43, %s983_s17  ;;  %592 = vrot.lane.b32.xlu1 %v581_v41, %s983_s17 }
 0x3dd   :  { %v583_v61 = vpop.permute.xlu0 %582  ;;  %v585_v0 = vpop.permute.xlu1 %584 }
 0x3de   :  { %v586_v4 = vsel %vm190_vm2, %v583_v61, %v585_v0  ;;  %v587_v5 = vsel %vm190_vm2, %v585_v0, %v583_v61 }
 0x3df   :  { %v588_v44 = vmul.f32 %v1176_v17, %v587_v5  ;;  %v589_v49 = vmul.f32 %v1181_v18, %v586_v4  ;;  %v375_v17 = vpop.f32.mrb[1].mxu1 }
 0x3e0   :  { %433 = vst [vmem:[%s1710_s4 + $0x98] sm:$0xff] %v375_v17  ;;  %v379_v18 = vpop.f32.mrb[2].mxu1 }
 0x3e1   :  { %v968_v50 = vpack.c.bf16 %v580_v43, %v588_v44  ;;  %v591_v51 = vpop.permute.xlu0 %590  ;;  %v593_v45 = vpop.permute.xlu1 %592  ;;  %v966_v46 = vpack.c.bf16 %v581_v41, %v589_v49  ;;  %434 = vst [vmem:[%s1710_s4 + $0xa0] sm:$0xff] %v379_v18 }
 0x3e2   :  { %v595_v47 = vsel %vm199_vm3, %v593_v45, %v591_v51  ;;  %v594_v48 = vsel %vm199_vm3, %v591_v51, %v593_v45 }
 0x3e3   :  { %v597_v53 = vmul.f32 %v1193_v25, %v595_v47  ;;  %967 = vmatprep.subr.bf16.mxu1 %v966_v46  ;;  %v596_v54 = vmul.f32 %v1206_v33, %v594_v48  ;;  %v381_v25 = vpop.f32.mrb[3].mxu1 }
 0x3e4   :  { %969 = vmatpush1.bf16.msra.mxu1 %v968_v50  ;;  %435 = vst [vmem:[%s1710_s4 + $0xa8] sm:$0xff] %v381_v25  ;;  %v385_v33 = vpop.f32.mrb[4].mxu1 }
 0x3e5   :  { %602 = vmatprep.subr.mxu1 %v597_v53  ;;  %436 = vst [vmem:[%s1710_s4 + $0xb0] sm:$0xff] %v385_v33 }
 0x3e8   :  { %603 = vmatpush1.msra.mxu1 %v596_v54 }
 0x3e9   :  { %850 = vmatmul.mubr.msk.f32.vlgmr.msra.gmra.mrb[14].mxu1 %vm204_vm4, %v1227_v42  ;;  %v387_v42 = vpop.f32.mrb[5].mxu1 }
 0x3ea   :  { %668 = vmatprep.mubr.f32.mxu1 %v979_v3  ;;  %437 = vst [vmem:[%s1710_s4 + $0xb8] sm:$0xff] %v387_v42 }
 0x3ed   :  { %851 = vmatmul.mubr.msk.f32.gmra.mrb[16].mxu1 %vm204_vm4, %v1247_v52 }
 0x3ee   :  { %674 = vmatprep.mubr.f32.mxu1 %v979_v3 }
 0x3f1   :  { %852 = vmatmul.mubr.msk.f32.gmra.mrb[18].mxu1 %vm204_vm4, %v1267_v60 }
 0x3f2   :  { %680 = vmatprep.mubr.f32.mxu1 %v979_v3 }
 0x3f5   :  { %853 = vmatmul.mubr.msk.f32.gmra.mrb[20].mxu1 %vm204_vm4, %v1287_v8 }
 0x3f6   :  { %686 = vmatprep.mubr.f32.mxu1 %v979_v3 }
 0x3f9   :  { %854 = vmatmul.mubr.msk.f32.gmra.mrb[22].mxu1 %vm204_vm4, %v1307_v15 }
 0x3fa   :  { %692 = vmatprep.mubr.f32.mxu1 %v979_v3 }
 0x3fd   :  { %855 = vmatmul.mubr.msk.f32.gmra.mrb[24].mxu1 %vm204_vm4, %v1327_v24 }
 0x3fe   :  { %698 = vmatprep.mubr.f32.mxu1 %v979_v3 }
 0x401   :  { %856 = vmatmul.mubr.msk.f32.gmra.mrb[26].mxu1 %vm204_vm4, %v1347_v32 }
 0x402   :  { %704 = vmatprep.mubr.f32.mxu1 %v979_v3 }
 0x405   :  { %857 = vmatmul.mubr.msk.f32.gmra.mrb[28].mxu1 %vm204_vm4, %v1361_v38 }
 0x406   :  { %710 = vmatprep.mubr.f32.mxu1 %v979_v3 }
 0x409   :  { %858 = vmatmul.mubr.msk.f32.gmra.mrb[30].mxu1 %vm204_vm4, %v1369_v40 }
 0x40a   :  { %716 = vmatprep.mubr.f32.mxu1 %v979_v3 }
 0x40d   :  { %859 = vmatmul.mubr.msk.f32.gmra.mrb[32].mxu1 %vm204_vm4, %v1440_v11 }
 0x40e   :  { %722 = vmatprep.mubr.f32.mxu1 %v979_v3 }
 0x411   :  { %860 = vmatmul.mubr.msk.f32.gmra.mrb[34].mxu1 %vm204_vm4, %v1448_v12 }
 0x412   :  { %728 = vmatprep.mubr.f32.mxu1 %v979_v3 }
 0x415   :  { %861 = vmatmul.mubr.msk.f32.gmra.mrb[36].mxu1 %vm204_vm4, %v1456_v13 }
 0x416   :  { %734 = vmatprep.mubr.f32.mxu1 %v979_v3 }
 0x419   :  { %862 = vmatmul.mubr.msk.f32.gmra.mrb[38].mxu1 %vm204_vm4, %v1464_v14 }
 0x41a   :  { %740 = vmatprep.mubr.f32.mxu1 %v979_v3 }
 0x41d   :  { %863 = vmatmul.mubr.msk.f32.gmra.mrb[40].mxu1 %vm204_vm4, %v1472_v16 }
 0x41e   :  { %746 = vmatprep.mubr.f32.mxu1 %v979_v3 }
 0x421   :  { %864 = vmatmul.mubr.msk.f32.gmra.mrb[42].mxu1 %vm204_vm4, %v1480_v19 }
 0x422   :  { %752 = vmatprep.mubr.f32.mxu1 %v979_v3  ;;  %v391_v3 = vpop.f32.mrb[6].mxu1 }
 0x423   :  { %438 = vst [vmem:[%s1710_s4 + $0xc0] sm:$0xff] %v391_v3  ;;  %v393_v52 = vpop.f32.mrb[7].mxu1 }
 0x424   :  { %439 = vst [vmem:[%s1710_s4 + $0xc8] sm:$0xff] %v393_v52  ;;  %v397_v60 = vpop.f32.mrb[8].mxu1 }
 0x425   :  { %865 = vmatmul.mubr.msk.f32.gmra.mrb[44].mxu1 %vm204_vm4, %v1492_v26  ;;  %440 = vst [vmem:[%s1710_s4 + $0xd0] sm:$0xff] %v397_v60  ;;  %v399_v8 = vpop.f32.mrb[9].mxu1 }
 0x426   :  { %441 = vst [vmem:[%s1710_s4 + $0xd8] sm:$0xff] %v399_v8  ;;  %v403_v15 = vpop.f32.mrb[10].mxu1 }
 0x427   :  { %442 = vst [vmem:[%s1710_s4 + $0xe0] sm:$0xff] %v403_v15  ;;  %v405_v24 = vpop.f32.mrb[11].mxu1 }
 0x428   :  { %443 = vst [vmem:[%s1710_s4 + $0xe8] sm:$0xff] %v405_v24  ;;  %v409_v32 = vpop.f32.mrb[12].mxu1 }
 0x429   :  { %444 = vst [vmem:[%s1710_s4 + $0xf0] sm:$0xff] %v409_v32  ;;  %v411_v38 = vpop.f32.mrb[13].mxu1 }
 0x42a   :  { %445 = vst [vmem:[%s1710_s4 + $0xf8] sm:$0xff] %v411_v38 }
 0x4bc   :  { %v664_v40 = vpop.f32.mrb[14].mxu1 }
 0x4bd   :  { %866 = vst [vmem:[%s1710_s4 + $0x100] sm:$0xff] %v664_v40  ;;  %v666_v55 = vpop.f32.mrb[15].mxu1 }
 0x4be   :  { %867 = vst [vmem:[%s1710_s4 + $0x108] sm:$0xff] %v666_v55 }
 0x4c0   :  { %v670_v56 = vpop.f32.mrb[16].mxu1 }
 0x4c1   :  { %868 = vst [vmem:[%s1710_s4 + $0x110] sm:$0xff] %v670_v56  ;;  %v672_v57 = vpop.f32.mrb[17].mxu1 }
 0x4c2   :  { %869 = vst [vmem:[%s1710_s4 + $0x118] sm:$0xff] %v672_v57 }
 0x4c4   :  { %v676_v58 = vpop.f32.mrb[18].mxu1 }
 0x4c5   :  { %870 = vst [vmem:[%s1710_s4 + $0x120] sm:$0xff] %v676_v58  ;;  %v678_v62 = vpop.f32.mrb[19].mxu1 }
 0x4c6   :  { %871 = vst [vmem:[%s1710_s4 + $0x128] sm:$0xff] %v678_v62 }
 0x4c8   :  { %v682_v63 = vpop.f32.mrb[20].mxu1 }
 0x4c9   :  { %872 = vst [vmem:[%s1710_s4 + $0x130] sm:$0xff] %v682_v63  ;;  %v684_v1 = vpop.f32.mrb[21].mxu1 }
 0x4ca   :  { %873 = vst [vmem:[%s1710_s4 + $0x138] sm:$0xff] %v684_v1 }
 0x4cc   :  { %v688_v2 = vpop.f32.mrb[22].mxu1 }
 0x4cd   :  { %874 = vst [vmem:[%s1710_s4 + $0x140] sm:$0xff] %v688_v2  ;;  %v690_v6 = vpop.f32.mrb[23].mxu1 }
 0x4ce   :  { %875 = vst [vmem:[%s1710_s4 + $0x148] sm:$0xff] %v690_v6 }
 0x4d0   :  { %v694_v7 = vpop.f32.mrb[24].mxu1 }
 0x4d1   :  { %876 = vst [vmem:[%s1710_s4 + $0x150] sm:$0xff] %v694_v7  ;;  %v696_v9 = vpop.f32.mrb[25].mxu1 }
 0x4d2   :  { %877 = vst [vmem:[%s1710_s4 + $0x158] sm:$0xff] %v696_v9 }
 0x4d4   :  { %v700_v10 = vpop.f32.mrb[26].mxu1 }
 0x4d5   :  { %878 = vst [vmem:[%s1710_s4 + $0x160] sm:$0xff] %v700_v10  ;;  %v702_v11 = vpop.f32.mrb[27].mxu1 }
 0x4d6   :  { %879 = vst [vmem:[%s1710_s4 + $0x168] sm:$0xff] %v702_v11 }
 0x4d8   :  { %v706_v12 = vpop.f32.mrb[28].mxu1 }
 0x4d9   :  { %880 = vst [vmem:[%s1710_s4 + $0x170] sm:$0xff] %v706_v12  ;;  %v708_v13 = vpop.f32.mrb[29].mxu1 }
 0x4da   :  { %881 = vst [vmem:[%s1710_s4 + $0x178] sm:$0xff] %v708_v13 }
 0x4dc   :  { %v712_v14 = vpop.f32.mrb[30].mxu1 }
 0x4dd   :  { %882 = vst [vmem:[%s1710_s4 + $0x180] sm:$0xff] %v712_v14  ;;  %v714_v16 = vpop.f32.mrb[31].mxu1 }
 0x4de   :  { %883 = vst [vmem:[%s1710_s4 + $0x188] sm:$0xff] %v714_v16 }
 0x4e0   :  { %v718_v19 = vpop.f32.mrb[32].mxu1 }
 0x4e1   :  { %884 = vst [vmem:[%s1710_s4 + $0x190] sm:$0xff] %v718_v19  ;;  %v720_v20 = vpop.f32.mrb[33].mxu1 }
 0x4e2   :  { %885 = vst [vmem:[%s1710_s4 + $0x198] sm:$0xff] %v720_v20 }
 0x4e4   :  { %v724_v21 = vpop.f32.mrb[34].mxu1 }
 0x4e5   :  { %886 = vst [vmem:[%s1710_s4 + $0x1a0] sm:$0xff] %v724_v21  ;;  %v726_v22 = vpop.f32.mrb[35].mxu1 }
 0x4e6   :  { %887 = vst [vmem:[%s1710_s4 + $0x1a8] sm:$0xff] %v726_v22 }
 0x4e8   :  { %v730_v23 = vpop.f32.mrb[36].mxu1 }
 0x4e9   :  { %888 = vst [vmem:[%s1710_s4 + $0x1b0] sm:$0xff] %v730_v23  ;;  %v732_v26 = vpop.f32.mrb[37].mxu1 }
 0x4ea   :  { %889 = vst [vmem:[%s1710_s4 + $0x1b8] sm:$0xff] %v732_v26 }
 0x4ec   :  { %v736_v27 = vpop.f32.mrb[38].mxu1 }
 0x4ed   :  { %890 = vst [vmem:[%s1710_s4 + $0x1c0] sm:$0xff] %v736_v27  ;;  %v738_v28 = vpop.f32.mrb[39].mxu1 }
 0x4ee   :  { %891 = vst [vmem:[%s1710_s4 + $0x1c8] sm:$0xff] %v738_v28 }
 0x4f0   :  { %v742_v29 = vpop.f32.mrb[40].mxu1 }
 0x4f1   :  { %892 = vst [vmem:[%s1710_s4 + $0x1d0] sm:$0xff] %v742_v29  ;;  %v744_v30 = vpop.f32.mrb[41].mxu1 }
 0x4f2   :  { %893 = vst [vmem:[%s1710_s4 + $0x1d8] sm:$0xff] %v744_v30 }
 0x4f4   :  { %v748_v31 = vpop.f32.mrb[42].mxu1 }
 0x4f5   :  { %894 = vst [vmem:[%s1710_s4 + $0x1e0] sm:$0xff] %v748_v31  ;;  %v750_v34 = vpop.f32.mrb[43].mxu1 }
 0x4f6   :  { %895 = vst [vmem:[%s1710_s4 + $0x1e8] sm:$0xff] %v750_v34 }
 0x4f8   :  { %v754_v35 = vpop.f32.mrb[44].mxu1 }
 0x4f9   :  { %896 = vst [vmem:[%s1710_s4 + $0x1f0] sm:$0xff] %v754_v35  ;;  %v756_v36 = vpop.f32.mrb[45].mxu1 }
 0x4fa   :  { %897 = vst [vmem:[%s1710_s4 + $0x1f8] sm:$0xff] %v756_v36 }

</bundles_post_ra>
